<compile_context>
chip_gen: v7x
topology: tpu7x:2x2x1
jax: 0.10.0
libtpu: 0.0.40
codegen_flags: <defaults>
</compile_context>

<pallas_src>
import functools

import numpy as np

import jax
import jax.numpy as jnp
from jax.experimental import pallas as pl
from jax.experimental.pallas import tpu as pltpu

_BN_EPS = 1e-5
_NUM_CLASSES = 100
_LANES = 128


def get_configs():
    level_config = {
        "level1": [4 * (i + 1) for i in range(4)],
        "level2": [4 * (i + 1) for i in range(8)],
        "level3": [4 * (i + 1) for i in range(16)],
    }
    model_config = {}
    for i in range(0, 7):
        model_config[i] = level_config["level1"]
    for i in range(7, 13):
        model_config[i] = level_config["level2"]
    for i in range(13, 20):
        model_config[i] = level_config["level3"]
    return level_config, model_config


def _round_up(x, m):
    return (x + m - 1) // m * m


# --------------------------------------------------------------------------
# pltpu.roll direction probe (one tiny pallas_call, cached; runs once eagerly)
# --------------------------------------------------------------------------

@functools.lru_cache(maxsize=None)
def _roll_is_numpy_convention():
    """True iff pltpu.roll matches np.roll (result[i] = x[(i - shift) % n])."""

    def kernel(x_ref, o_ref):
        o_ref[...] = pltpu.roll(x_ref[...], 1, 1)

    x = jnp.tile(jax.lax.iota(jnp.float32, _LANES)[None, :], (8, 1))
    y = pl.pallas_call(
        kernel,
        out_shape=jax.ShapeDtypeStruct((8, _LANES), jnp.float32),
        in_specs=[pl.BlockSpec(memory_space=pltpu.MemorySpace.VMEM)],
        out_specs=pl.BlockSpec(memory_space=pltpu.MemorySpace.VMEM),
    )(x)
    v = float(y[0, 0])
    if v == float(_LANES - 1):
        return True
    if v == 1.0:
        return False
    raise RuntimeError(f"unexpected pltpu.roll probe value: {v}")


# --------------------------------------------------------------------------
# In-kernel helpers (padded-frame layout: rows = channels, lanes = N*Hp*Wp)
# --------------------------------------------------------------------------

def _rot_lanes(x, d):
    """y[:, m] = x[:, (m + d) % M].  Wrapped lanes only ever feed masked outputs."""
    m = x.shape[-1]
    d = d % m
    if d == 0:
        return x
    shift = (m - d) if _roll_is_numpy_convention() else d
    return pltpu.roll(x, shift, 1)


def _conv3x3_frame(w_ref, x, wp):
    """3x3 / stride-1 conv in zero-ring padded-frame layout.

    w_ref: (9, Cout, Cin) f32, tap-major (kh*3+kw), BN scale pre-folded.
    x:     (Cin, M) f32 value in frame layout (padding ring / tail are zero).
    wp:    padded frame width (W + 2).
    Returns (Cout, M) f32; ring/tail lanes hold garbage (caller masks them).
    """
    acc = None
    for kh in range(3):
        for kw in range(3):
            d = (kh - 1) * wp + (kw - 1)
            t = kh * 3 + kw
            part = jnp.dot(w_ref[t], _rot_lanes(x, d),
                           preferred_element_type=jnp.float32)
            acc = part if acc is None else acc + part
    return acc


# --------------------------------------------------------------------------
# Kernel bodies
# --------------------------------------------------------------------------

def _first_conv_kernel(x_ref, w_ref, b_ref, mask_ref, o_ref, *, wp):
    """first_conv + first_bn (folded) + ReLU, in frame layout."""
    y = _conv3x3_frame(w_ref, x_ref[...], wp) + b_ref[...]
    o_ref[...] = jnp.maximum(y, 0.0) * mask_ref[...]


def _make_block_kernel(*, proj, head, wp):
    """Fused stride-1 residual block: conv1+BN+ReLU, conv2+BN, shortcut
    (identity or 1x1 conv + BN), add, ReLU.  With head=True the avgpool +
    flatten + Linear classifier is fused into the epilogue."""

    def kernel(*refs):
        if proj:
            (x_ref, w1_ref, b1_ref, w2_ref, b2_ref,
             wsc_ref, bsc_ref, mask_ref, *rest) = refs
        else:
            x_ref, w1_ref, b1_ref, w2_ref, b2_ref, mask_ref, *rest = refs
        if head:
            pool_ref, fcw_ref, fcb_ref, o_ref = rest
        else:
            (o_ref,) = rest

        x = x_ref[...]
        mask = mask_ref[...]
        h = jnp.maximum(_conv3x3_frame(w1_ref, x, wp) + b1_ref[...], 0.0) * mask
        y = _conv3x3_frame(w2_ref, h, wp) + b2_ref[...]
        if proj:
            y = y + jnp.dot(wsc_ref[...], x,
                            preferred_element_type=jnp.float32) + bsc_ref[...]
        else:
            y = y + x
        y = jnp.maximum(y, 0.0) * mask
        if head:
            feat = jnp.dot(y, pool_ref[...],
                           preferred_element_type=jnp.float32)       # (C, N)
            o_ref[...] = jnp.dot(fcw_ref[...], feat,
                                 preferred_element_type=jnp.float32) + fcb_ref[...]
        else:
            o_ref[...] = y

    return kernel


def _make_s2_block_kernel(*, wp):
    """Fused stride-2 residual block: conv1 (from pre-built frame-position
    patches) + BN + ReLU, conv2 (in-kernel shifted matmuls) + BN,
    1x1/stride-2 projection + BN, add, ReLU."""

    def kernel(p1_ref, xsc_ref, w1_ref, b1_ref, w2_ref, b2_ref,
               wsc_ref, bsc_ref, mask_ref, o_ref):
        mask = mask_ref[...]
        h = jnp.dot(w1_ref[...], p1_ref[...],
                    preferred_element_type=jnp.float32) + b1_ref[...]
        h = jnp.maximum(h, 0.0) * mask
        y = _conv3x3_frame(w2_ref, h, wp) + b2_ref[...]
        y = y + jnp.dot(wsc_ref[...], xsc_ref[...],
                        preferred_element_type=jnp.float32) + bsc_ref[...]
        o_ref[...] = jnp.maximum(y, 0.0) * mask

    return kernel


# --------------------------------------------------------------------------
# pallas_call plumbing (no grid: every operand fits VMEM at slimmable widths)
# --------------------------------------------------------------------------

def _vmem_spec():
    return pl.BlockSpec(memory_space=pltpu.MemorySpace.VMEM)


def _call(kernel, args, out_shape):
    return pl.pallas_call(
        kernel,
        out_shape=out_shape,
        in_specs=[_vmem_spec() for _ in args],
        out_specs=_vmem_spec(),
    )(*args)


# --------------------------------------------------------------------------
# XLA-side layout glue (tiny, done once per stage)
# --------------------------------------------------------------------------

def _to_frame(x_cnhw):
    """(C, N, H, W) -> zero-ring padded-frame layout (C, Mpad), Mpad % 128 == 0."""
    C, N, H, W = x_cnhw.shape
    hp, wp = H + 2, W + 2
    m = N * hp * wp
    mpad = _round_up(m, _LANES)
    xf = jnp.pad(x_cnhw, ((0, 0), (0, 0), (1, 1), (1, 1))).reshape(C, m)
    return jnp.pad(xf, ((0, 0), (0, mpad - m)))


def _frame_mask(N, H, W):
    """(1, Mpad) f32: 1.0 at interior pixels, 0.0 on the padding ring / tail."""
    hp, wp = H + 2, W + 2
    m = N * hp * wp
    mpad = _round_up(m, _LANES)
    msk = np.zeros((N, hp, wp), np.float32)
    msk[:, 1:H + 1, 1:W + 1] = 1.0
    msk = np.pad(msk.reshape(m), (0, mpad - m))
    return jnp.asarray(msk.reshape(1, mpad))


def _pool_matrix(N, H, W):
    """(Mpad, N) f32: column n averages the interior pixels of image n."""
    hp, wp = H + 2, W + 2
    m = N * hp * wp
    mpad = _round_up(m, _LANES)
    pool = np.zeros((N, hp, wp, N), np.float32)
    for n in range(N):
        pool[n, 1:H + 1, 1:W + 1, n] = 1.0 / (H * W)
    pool = np.pad(pool.reshape(m, N), ((0, mpad - m), (0, 0)))
    return jnp.asarray(pool)


def _s2_patches_and_shortcut(x_frame, C, N, H, W):
    """Frame-position im2col patches for a 3x3/stride-2 conv, plus the subsampled
    input for the 1x1/stride-2 projection shortcut, both in the (H//2, W//2)
    output-frame layout.  Ring/tail columns are garbage (masked in the kernel)."""
    hp, wp = H + 2, W + 2
    ho, wo = H // 2, W // 2
    hpo, wpo = ho + 2, wo + 2
    mo = N * hpo * wpo
    mpado = _round_up(mo, _LANES)
    x4 = x_frame[:, :N * hp * wp].reshape(C, N, hp, wp)
    xpp = jnp.pad(x4, ((0, 0), (0, 0), (2, 2), (2, 2)))
    cols = []
    for kh in range(3):
        for kw in range(3):
            cols.append(xpp[:, :, kh:kh + 2 * hpo - 1:2, kw:kw + 2 * wpo - 1:2])
    p1 = jnp.concatenate(cols, axis=0).reshape(9 * C, mo)
    p1 = jnp.pad(p1, ((0, 0), (0, mpado - mo)))
    xsc = xpp[:, :, 1:2 * hpo:2, 1:2 * wpo:2].reshape(C, mo)
    xsc = jnp.pad(xsc, ((0, 0), (0, mpado - mo)))
    return p1, xsc


# --------------------------------------------------------------------------
# Parameters (deterministic, matching MutableModel._initialize_weights)
# --------------------------------------------------------------------------

def init_params(key, num_classes=_NUM_CLASSES):
    _, mc = get_configs()
    keys = iter(jax.random.split(key, 64))

    def normal(shape, std):
        return std * jax.random.normal(next(keys), shape, jnp.float32)

    params = {"first_w": normal((mc[0][-1], 3, 3, 3), 0.01)}
    blocks = []
    for k in range(9):
        mi1, mi2, mi3 = 2 * k + 1, 2 * k + 2, 2 * k + 3
        blocks.append({
            "w1": normal((mc[mi2][-1], mc[mi1][-1], 3, 3), 1.0 / mc[mi1][-1]),
            "w2": normal((mc[mi3][-1], mc[mi2][-1], 3, 3), 1.0 / mc[mi2][-1]),
            "wsc": normal((mc[mi3][-1], mc[mi1][-1], 1, 1), 1.0 / mc[mi1][-1]),
        })
    params["blocks"] = blocks
    params["fc_w"] = normal((num_classes, mc[17][-1]), 0.01)
    params["fc_b"] = jnp.zeros((num_classes,), jnp.float32)
    return params


def _bn_identity(c):
    """BN params as set by _initialize_weights: weight=1, bias=1e-4, mean=0, var=1."""
    return (jnp.ones((c,), jnp.float32),
            jnp.full((c,), 1e-4, jnp.float32),
            jnp.zeros((c,), jnp.float32),
            jnp.ones((c,), jnp.float32))


def _fold_bn(bn_params, c):
    gamma, beta, mean, var = bn_params
    inv = gamma / jnp.sqrt(var + _BN_EPS)
    shift = (beta - mean * inv).reshape(c, 1).astype(jnp.float32)
    return inv.astype(jnp.float32), shift


def _w9(w_oihw, scale):
    """OIHW -> (9, O, I) tap-major with the BN scale folded into the rows."""
    o, i, k, _ = w_oihw.shape
    w = jnp.transpose(w_oihw, (2, 3, 0, 1)).reshape(k * k, o, i)
    return (w * scale[None, :, None]).astype(jnp.float32)


def _wmat(w_oihw, scale):
    """OIHW -> (O, 9*I) with (kh, kw, cin)-major columns and BN scale folded in."""
    o, i, k, _ = w_oihw.shape
    w = jnp.transpose(w_oihw, (0, 2, 3, 1)).reshape(o, k * k * i)
    return (w * scale[:, None]).astype(jnp.float32)


def fold_params(params, arc):
    """Slice full-width weights to the arc widths, fold the BN scale into the conv
    weights and repack for the kernels -- once, outside the forward path.

    Wiring (matches get_true_arc_list / modify_channel):
      first_conv out = arc[0]
      block k: conv1 arc[2k] -> arc[2k+1] (stride s_k), conv2 arc[2k+1] -> arc[2k+2],
               projection shortcut arc[2k] -> arc[2k+2] iff (channels change or stride=2)
      classifier in = arc[18], out = 100
    """
    strides = [1, 1, 1, 2, 1, 1, 2, 1, 1]   # layer1 / layer2 / layer3
    c0 = arc[0]
    scale0, shift0 = _fold_bn(_bn_identity(c0), c0)
    folded = {"first": {"w": _w9(params["first_w"][:c0, :3], scale0), "b": shift0}}

    blocks = []
    for k in range(9):
        cin, cmid, cout, s = arc[2 * k], arc[2 * k + 1], arc[2 * k + 2], strides[k]
        p = params["blocks"][k]
        sc1, b1 = _fold_bn(_bn_identity(cmid), cmid)
        sc2, b2 = _fold_bn(_bn_identity(cout), cout)
        blk = {"cin": cin, "cmid": cmid, "cout": cout, "stride": s,
               "b1": b1, "b2": b2,
               "w2": _w9(p["w2"][:cout, :cmid], sc2),
               # mirrors `res.shape[1] != x.shape[1] or res.shape[2] != x.shape[2]`
               "proj": (cout != cin) or (s != 1)}
        if s == 2:
            blk["w1m"] = _wmat(p["w1"][:cmid, :cin], sc1)
        else:
            blk["w1"] = _w9(p["w1"][:cmid, :cin], sc1)
        if blk["proj"]:
            ssc, bsc = _fold_bn(_bn_identity(cout), cout)
            blk["wsc"] = (p["wsc"][:cout, :cin, 0, 0] * ssc[:, None]).astype(jnp.float32)
            blk["bsc"] = bsc
        blocks.append(blk)
    folded["blocks"] = blocks
    folded["fc_w"] = params["fc_w"][:, :arc[18]].astype(jnp.float32)
    folded["fc_b"] = params["fc_b"].reshape(-1, 1).astype(jnp.float32)
    return folded


# --------------------------------------------------------------------------
# Forward pass (MutableModel.forward with num_blocks = [3, 3, 3])
# --------------------------------------------------------------------------

def mutable_model_forward(x_nchw, folded):
    """x_nchw: (N, 3, H, W) float32; folded: output of fold_params(params, arc)."""
    N, _, H, W = x_nchw.shape
    assert H % 4 == 0 and W % 4 == 0

    x = _to_frame(jnp.transpose(x_nchw, (1, 0, 2, 3)).astype(jnp.float32))
    mask = _frame_mask(N, H, W)
    cur_h, cur_w = H, W

    # first conv + first BN + ReLU (one fused call)
    fw = folded["first"]
    c0 = fw["w"].shape[1]
    x = _call(functools.partial(_first_conv_kernel, wp=cur_w + 2),
              (x, fw["w"], fw["b"], mask),
              jax.ShapeDtypeStruct((c0, x.shape[1]), jnp.float32))

    blocks = folded["blocks"]
    assert blocks[-1]["stride"] == 1   # ResNet-20: head is fused into the last block
    for bi, blk in enumerate(blocks):
        last = bi == len(blocks) - 1
        if blk["stride"] == 2:
            p1, xsc = _s2_patches_and_shortcut(x, blk["cin"], N, cur_h, cur_w)
            cur_h, cur_w = cur_h // 2, cur_w // 2
            mask = _frame_mask(N, cur_h, cur_w)
            x = _call(_make_s2_block_kernel(wp=cur_w + 2),
                      (p1, xsc, blk["w1m"], blk["b1"], blk["w2"], blk["b2"],
                       blk["wsc"], blk["bsc"], mask),
                      jax.ShapeDtypeStruct((blk["cout"], p1.shape[1]), jnp.float32))
        else:
            args = [x, blk["w1"], blk["b1"], blk["w2"], blk["b2"]]
            if blk["proj"]:
                args += [blk["wsc"], blk["bsc"]]
            args += [mask]
            if last:
                # avgpool -> flatten -> classifier fused into the last block call
                pool = _pool_matrix(N, cur_h, cur_w)
                args += [pool, folded["fc_w"], folded["fc_b"]]
                logits_t = _call(
                    _make_block_kernel(proj=blk["proj"], head=True, wp=cur_w + 2),
                    tuple(args),
                    jax.ShapeDtypeStruct((folded["fc_w"].shape[0], N), jnp.float32))
                return jnp.transpose(logits_t)            # (N, num_classes)
            x = _call(_make_block_kernel(proj=blk["proj"], head=False, wp=cur_w + 2),
                      tuple(args),
                      jax.ShapeDtypeStruct((blk["cout"], x.shape[1]), jnp.float32))

    raise RuntimeError("unreachable: last block must have stride 1")


# --------------------------------------------------------------------------

if __name__ == "__main__":
    key = jax.random.PRNGKey(0)
    pkey, xkey = jax.random.split(key)

    params = init_params(pkey)

    # arc: 7 level1 widths, 6 level2 widths, 7 level3 widths (valid slimmable choices)
    arc = [8] * 7 + [16] * 6 + [32] * 7
    folded = fold_params(params, arc)              # hoisted out of the forward path

    _ = _roll_is_numpy_convention()                # prime the roll-direction probe

    # small input consistent with the module (CIFAR-style NCHW, 3 input channels)
    x = jax.random.normal(xkey, (2, 3, 16, 16), jnp.float32)

    fwd = jax.jit(functools.partial(mutable_model_forward, folded=folded))
    logits = fwd(x)
    jax.block_until_ready(logits)

    assert logits.shape == (2, _NUM_CLASSES), logits.shape
    assert bool(jnp.all(jnp.isfinite(logits)))
    print("KERNEL_OK")
</pallas_src>

<mosaic_0001>
module attributes {stable_mosaic.version = 11 : i64} {
  func.func @kernel(%arg0: memref<8x128xf32, #tpu.memory_space<vmem>>, %arg1: memref<8x128xf32, #tpu.memory_space<vmem>>) attributes {dimension_semantics = [], scalar_prefetch = 0 : i64, scratch_operands = 0 : i64, tpu.core_type = #tpu.core_type<tc>} {
    %c0 = arith.constant 0 : index
    %c0_0 = arith.constant 0 : index
    %0 = vector.load %arg0[%c0, %c0_0] : memref<8x128xf32, #tpu.memory_space<vmem>>, vector<8x128xf32>
    %c1_i32 = arith.constant 1 : i32
    %1 = tpu.dynamic_rotate %0 by %c1_i32 dim 1 : vector<8x128xf32>, i32 -> vector<8x128xf32>
    %c0_1 = arith.constant 0 : index
    %c0_2 = arith.constant 0 : index
    %2 = vector.load %arg1[%c0_1, %c0_2] : memref<8x128xf32, #tpu.memory_space<vmem>>, vector<8x128xf32>
    tpu.vector_store %arg1[%c0_1, %c0_2], %1 {strides = array<i32>} : memref<8x128xf32, #tpu.memory_space<vmem>>, vector<8x128xf32>,
    return
  }
}

</mosaic_0001>

<bundles_post_ra>
// kernel: tpu_custom_call.1
= control target key start
LH: loop header
LB: loop body
LE: loop exit
PB: predicated region body
PF: predicated region fallthrough
CT: control target
= control target key end

     0   :  { %6 = vsyncpa [#allocation3], 0  ;;  %s128_s0 = inlined_call_operand.hbm [shape: f32[8,128], index: 0, kind: input, shape index: {}]   ;;  %s129_s1 = inlined_call_operand.hbm [shape: f32[8,128], index: 1, kind: output, shape index: {}]  }
   0x1   :  { %7 = vsyncpa [#allocation4], 0  ;;  %s91_s6 = smov [#allocation2]   ;;  %s43_s10 = scalar_lea.hbm %s128_s0, 128 }
   0x2   :  { %s14_s7 = sshll.u32 %s91_s6, 4  ;;  %p44_p0 = scmp.ne.s32.totalorder %s128_s0, %s43_s10  ;;  %s15_s7 = int_to_ptr.vmem [resolvable:$true] %s14_s7 }
   0x3   :  { %p47_p1 = scmp.lt.u32.totalorder %s43_s10, %s128_s0 }
   0x5   :  { %p49_p2 = pnand %p47_p1, %p44_p0 }
   0x7   :  { %52 = shalt.err (!%p49_p2)
}
   0x8   :  { %s53_s15 = scalar_lea.vmem %s15_s7, 128  ;;  %p58_p4 = scmp.lt.s32.totalorder %s15_s7, %s15_s7 }
   0x9   :  { %p54_p3 = scmp.ne.s32.totalorder %s15_s7, %s53_s15  ;;  %p59_p5 = scmp.lt.s32.totalorder %s53_s15, %s53_s15 }
   0xb   :  { %p60_p6 = por %p59_p5, %p58_p4 }
   0xd   :  { %p61_p7 = pnand %p60_p6, %p54_p3 }
   0xf   :  { %64 = shalt.err (!%p61_p7)
}
  0x10   :  { %17 = dma.hbm_to_vmem [thread:$0]  %s128_s0, 128, %s15_s7, [#allocation3]  }
  0x11   :  { %87 = dma.done.wait [#allocation3], 128  }
  0x12   :  { %88 = vsyncadd [#allocation3], 4294967168  ;;  %v21_v0 = vld [vmem:[#allocation2] sm:$0xff]  ;;  %s92_s18 = smov 1   ;;  %s93_s19 = smov [#allocation5]  }
  0x13   :  { %22 = vrot.lane.b32.xlu0 %v21_v0, %s92_s18  ;;  %s31_s20 = sshll.u32 %s93_s19, 4  ;;  %s32_s20 = int_to_ptr.vmem [resolvable:$true] %s31_s20 }
  0x14   :  { %s65_s21 = scalar_lea.vmem %s32_s20, 128  ;;  %p70_p9 = scmp.lt.s32.totalorder %s32_s20, %s32_s20 }
  0x15   :  { %p66_p8 = scmp.ne.s32.totalorder %s32_s20, %s65_s21  ;;  %p71_p10 = scmp.lt.s32.totalorder %s65_s21, %s65_s21 }
  0x17   :  { %p72_p11 = por %p71_p10, %p70_p9 }
  0x19   :  { %p73_p12 = pnand %p72_p11, %p66_p8 }
  0x85   :  { %v23_v1 = vpop.permute.xlu0 %22 }
  0x86   :  { %24 = vst [vmem:[#allocation5] sm:$0xff] %v23_v1 }
  0x87   :  { %76 = shalt.err (!%p73_p12)
}
  0x88   :  { %s77_s0 = scalar_lea.hbm %s129_s1, 128 }
  0x89   :  { %p78_p13 = scmp.ne.s32.totalorder %s129_s1, %s77_s0  ;;  %p81_p0 = scmp.lt.u32.totalorder %s77_s0, %s129_s1 }
  0x8b   :  { %p83_p1 = pnand %p81_p0, %p78_p13 }
  0x8d   :  { %86 = shalt.err (!%p83_p1)
}
  0x8e   :  { %34 = dma.vmem_to_hbm [thread:$0]  %s32_s20, 128, %s129_s1, [#allocation4]  }
  0x8f   :  { %89 = dma.done.wait [#allocation4], 128  }
  0x90   :  { %90 = vsyncadd [#allocation4], 4294967168 }
  0x91   :  { %38 = vsyncpa [#allocation3], 1 }
  0x92   :  { %39 = vsyncpa [#allocation4], 1 }

</bundles_post_ra>
